<compile_context>
chip_gen: v7x
topology: tpu7x:2x2x1
jax: 0.10.0
libtpu: 0.0.40
codegen_flags: <defaults>
</compile_context>

<pallas_src>
import functools

import jax
import jax.numpy as jnp
from jax.experimental import pallas as pl
from jax.experimental.pallas import tpu as pltpu

LANE = 128      # vreg lane width (last dim)
SUBLANE = 8     # vreg sublane width (second-to-last dim)


def _round_up(v, m):
    return (v + m - 1) // m * m


def _default_bf16_tanh():
    # bf16 tanh only pays off on chips with a bf16 EUP/VPU (v6e, v7x).
    try:
        kind = jax.devices()[0].device_kind.lower()
    except Exception:
        return True
    return not any(tag in kind for tag in ("v2", "v3", "v4", "v5"))


def actor_kernel(x_ref, w1_ref, b1_ref, w2_ref, b2_ref, w3_ref, b3_ref, o_ref,
                 *, max_action, bf16_tanh):
    # Cast x to bf16 in-kernel (MXU-native), accumulate every dot in f32.
    x = x_ref[...].astype(jnp.bfloat16)

    # Layer 1: Linear + Tanh
    z1 = jnp.dot(x, w1_ref[...], preferred_element_type=jnp.float32) + b1_ref[...]
    h1 = jnp.tanh(z1.astype(jnp.bfloat16)) if bf16_tanh \
        else jnp.tanh(z1).astype(jnp.bfloat16)

    # Layer 2: Linear + Tanh
    z2 = jnp.dot(h1, w2_ref[...], preferred_element_type=jnp.float32) + b2_ref[...]
    h2 = jnp.tanh(z2.astype(jnp.bfloat16)) if bf16_tanh \
        else jnp.tanh(z2).astype(jnp.bfloat16)

    # Layer 3: Linear + Tanh, scaled by max_action (f32 on the output path).
    z3 = jnp.dot(h2, w3_ref[...], preferred_element_type=jnp.float32) + b3_ref[...]
    o_ref[...] = (jnp.tanh(z3) * max_action).astype(o_ref.dtype)


def prepare_params(params):
    """One-time pad/cast of the Actor params for the Pallas kernel.

    Hidden dims are zero-padded to lane multiples (exact: tanh(0)=0 meets zero
    weight rows downstream); state/action dims are left unpadded. Weights are
    cast to bf16, biases stay f32. Call once and reuse across forwards.
    """
    w1, b1, w2, b2, w3, b3 = params
    S, H1 = w1.shape
    H2 = w2.shape[1]
    A = w3.shape[1]
    H1p = _round_up(H1, LANE)
    H2p = _round_up(H2, LANE)

    def pad2(a, rows, cols, dtype):
        a = a.astype(dtype)
        return jnp.pad(a, ((0, rows - a.shape[0]), (0, cols - a.shape[1])))

    return (
        pad2(w1, S, H1p, jnp.bfloat16),
        pad2(b1.reshape(1, -1), 1, H1p, jnp.float32),
        pad2(w2, H1p, H2p, jnp.bfloat16),
        pad2(b2.reshape(1, -1), 1, H2p, jnp.float32),
        pad2(w3, H2p, A, jnp.bfloat16),
        pad2(b3.reshape(1, -1), 1, A, jnp.float32),
    )


def actor_forward(x, prepared_params, max_action, *, tile_b=1024,
                  bf16_tanh=None):
    """Actor MLP forward as a single Pallas kernel, tiled over the batch.

    `prepared_params` must come from prepare_params() (cached by the caller).
    """
    if bf16_tanh is None:
        bf16_tanh = _default_bf16_tanh()

    w1p, b1p, w2p, b2p, w3p, b3p = prepared_params
    B, S = x.shape
    H1p = w1p.shape[1]
    H2p = w2p.shape[1]
    A = w3p.shape[1]

    # Balanced batch tiles (avoid a >95%-padding fringe tile) and, when the
    # batch allows it, at least 2 grid steps so "parallel" sharding can use
    # both TensorCores on v7x.
    if B >= 2 * SUBLANE:
        num_tiles = max(pl.cdiv(B, tile_b), 2)
    else:
        num_tiles = 1
    TILE_B = _round_up(pl.cdiv(B, num_tiles), SUBLANE)
    num_tiles = pl.cdiv(B, TILE_B)
    Bp = num_tiles * TILE_B

    xp = x.astype(jnp.float32)
    if Bp != B:
        xp = jnp.pad(xp, ((0, Bp - B), (0, 0)))

    def resident(shape):
        # Whole array as one block, same block index every step -> VMEM-resident.
        return pl.BlockSpec(shape, lambda i: (0, 0))

    flops = 2 * Bp * (S * H1p + H1p * H2p + H2p * A)
    transcendentals = Bp * (H1p + H2p + A)
    bytes_accessed = int(
        Bp * S * 4                                   # x (f32)
        + (w1p.size + w2p.size + w3p.size) * 2       # bf16 weights
        + (b1p.size + b2p.size + b3p.size) * 4       # f32 biases
        + Bp * A * 4                                 # f32 output
    )

    kernel = functools.partial(
        actor_kernel, max_action=float(max_action), bf16_tanh=bool(bf16_tanh))

    out = pl.pallas_call(
        kernel,
        out_shape=jax.ShapeDtypeStruct((Bp, A), jnp.float32),
        grid=(num_tiles,),
        in_specs=[
            pl.BlockSpec((TILE_B, S), lambda i: (i, 0)),
            resident(w1p.shape), resident(b1p.shape),
            resident(w2p.shape), resident(b2p.shape),
            resident(w3p.shape), resident(b3p.shape),
        ],
        out_specs=pl.BlockSpec((TILE_B, A), lambda i: (i, 0)),
        compiler_params=pltpu.CompilerParams(
            dimension_semantics=("parallel",)),
        cost_estimate=pl.CostEstimate(
            flops=flops,
            transcendentals=transcendentals,
            bytes_accessed=bytes_accessed),
    )(xp, w1p, b1p, w2p, b2p, w3p, b3p)

    return out[:B] if Bp != B else out


def xavier_uniform(key, fan_in, fan_out, gain=1.0):
    # Matches nn.init.xavier_uniform_ semantics (gain=1).
    limit = gain * jnp.sqrt(6.0 / (fan_in + fan_out))
    # Stored as (in, out) = transpose of PyTorch's (out, in) weight.
    return jax.random.uniform(key, (fan_in, fan_out), jnp.float32, -limit, limit)


def make_params(key, state_dim, action_dim, hidden_layer=(256, 256)):
    k1, k2, k3 = jax.random.split(key, 3)
    h1, h2 = hidden_layer
    w1 = xavier_uniform(k1, state_dim, h1)
    b1 = jnp.zeros((1, h1), jnp.float32)
    w2 = xavier_uniform(k2, h1, h2)
    b2 = jnp.zeros((1, h2), jnp.float32)
    w3 = xavier_uniform(k3, h2, action_dim)
    b3 = jnp.zeros((1, action_dim), jnp.float32)
    return (w1, b1, w2, b2, w3, b3)


def actor_reference(x, params, max_action):
    w1, b1, w2, b2, w3, b3 = params
    h = jnp.tanh(x @ w1 + b1)
    h = jnp.tanh(h @ w2 + b2)
    return jnp.tanh(h @ w3 + b3) * max_action


if __name__ == "__main__":
    # Small shapes consistent with the module's forward: x is (batch, state_dim).
    batch = 8
    state_dim = 16
    action_dim = 8
    hidden_layer = (32, 32)
    max_action = 2.0

    key = jax.random.PRNGKey(0)
    kx, kp = jax.random.split(key)
    x = jax.random.normal(kx, (batch, state_dim), jnp.float32)
    params = make_params(kp, state_dim, action_dim, hidden_layer)

    prepared = prepare_params(params)          # one-time pad/cast, then reused
    out = actor_forward(x, prepared, max_action)
    out = jax.block_until_ready(out)

    ref = actor_reference(x, params, max_action)
    assert out.shape == (batch, action_dim)
    # bf16 weights/activations inside the kernel -> loosened tolerance vs f32 ref.
    assert jnp.allclose(out, ref, atol=5e-2, rtol=5e-2), (
        float(jnp.max(jnp.abs(out - ref))))

    print("KERNEL_OK")
</pallas_src>

<mosaic_0001>
module attributes {stable_mosaic.version = 11 : i64} {
  func.func @actor_kernel(%arg0: i32, %arg1: memref<8x16xf32, #tpu.memory_space<vmem>>, %arg2: memref<16x128xbf16, #tpu.memory_space<vmem>>, %arg3: memref<1x128xf32, #tpu.memory_space<vmem>>, %arg4: memref<128x128xbf16, #tpu.memory_space<vmem>>, %arg5: memref<1x128xf32, #tpu.memory_space<vmem>>, %arg6: memref<128x8xbf16, #tpu.memory_space<vmem>>, %arg7: memref<1x8xf32, #tpu.memory_space<vmem>>, %arg8: memref<8x8xf32, #tpu.memory_space<vmem>>) attributes {dimension_semantics = [#tpu.dimension_semantics<parallel>], iteration_bounds = array<i64: 1>, scalar_prefetch = 0 : i64, scratch_operands = 0 : i64, tpu.core_type = #tpu.core_type<tc>, window_params = [{transform_indices = @transform_0, window_bounds = array<i64: 8, 16>}, {pipeline_mode = #tpu.pipeline_mode<synchronous>, transform_indices = @transform_1, window_bounds = array<i64: 16, 128>}, {pipeline_mode = #tpu.pipeline_mode<synchronous>, transform_indices = @transform_2, window_bounds = array<i64: 1, 128>}, {pipeline_mode = #tpu.pipeline_mode<synchronous>, transform_indices = @transform_3, window_bounds = array<i64: 128, 128>}, {pipeline_mode = #tpu.pipeline_mode<synchronous>, transform_indices = @transform_4, window_bounds = array<i64: 1, 128>}, {pipeline_mode = #tpu.pipeline_mode<synchronous>, transform_indices = @transform_5, window_bounds = array<i64: 128, 8>}, {pipeline_mode = #tpu.pipeline_mode<synchronous>, transform_indices = @transform_6, window_bounds = array<i64: 1, 8>}, {transform_indices = @transform_7, window_bounds = array<i64: 8, 8>}]} {
    %c0 = arith.constant 0 : index
    %c0_0 = arith.constant 0 : index
    %0 = vector.load %arg1[%c0, %c0_0] : memref<8x16xf32, #tpu.memory_space<vmem>>, vector<8x16xf32>
    %1 = arith.truncf %0 : vector<8x16xf32> to vector<8x16xbf16>
    %c0_1 = arith.constant 0 : index
    %c0_2 = arith.constant 0 : index
    %2 = vector.load %arg2[%c0_1, %c0_2] : memref<16x128xbf16, #tpu.memory_space<vmem>>, vector<16x128xbf16>
    %cst = arith.constant dense<0.000000e+00> : vector<8x128xf32>
    %3 = tpu.matmul %1, %2, %cst {dimension_numbers = #tpu.dot_dimension_numbers<[1], [0], [0], [1], [0, 0, 1, 1], [], []>} : vector<8x16xbf16>, vector<16x128xbf16>, vector<8x128xf32> -> vector<8x128xf32>
    %c0_3 = arith.constant 0 : index
    %c0_4 = arith.constant 0 : index
    %4 = vector.load %arg3[%c0_3, %c0_4] : memref<1x128xf32, #tpu.memory_space<vmem>>, vector<1x128xf32>
    %5 = vector.broadcast %4 : vector<1x128xf32> to vector<8x128xf32>
    %6 = arith.addf %3, %5 : vector<8x128xf32>
    %7 = arith.truncf %6 : vector<8x128xf32> to vector<8x128xbf16>
    %8 = math.tanh %7 : vector<8x128xbf16>
    %c0_5 = arith.constant 0 : index
    %c0_6 = arith.constant 0 : index
    %9 = vector.load %arg4[%c0_5, %c0_6] : memref<128x128xbf16, #tpu.memory_space<vmem>>, vector<128x128xbf16>
    %cst_7 = arith.constant dense<0.000000e+00> : vector<8x128xf32>
    %10 = tpu.matmul %8, %9, %cst_7 {dimension_numbers = #tpu.dot_dimension_numbers<[1], [0], [0], [1], [0, 0, 1, 1], [], []>} : vector<8x128xbf16>, vector<128x128xbf16>, vector<8x128xf32> -> vector<8x128xf32>
    %c0_8 = arith.constant 0 : index
    %c0_9 = arith.constant 0 : index
    %11 = vector.load %arg5[%c0_8, %c0_9] : memref<1x128xf32, #tpu.memory_space<vmem>>, vector<1x128xf32>
    %12 = vector.broadcast %11 : vector<1x128xf32> to vector<8x128xf32>
    %13 = arith.addf %10, %12 : vector<8x128xf32>
    %14 = arith.truncf %13 : vector<8x128xf32> to vector<8x128xbf16>
    %15 = math.tanh %14 : vector<8x128xbf16>
    %c0_10 = arith.constant 0 : index
    %c0_11 = arith.constant 0 : index
    %16 = vector.load %arg6[%c0_10, %c0_11] : memref<128x8xbf16, #tpu.memory_space<vmem>>, vector<128x8xbf16>
    %cst_12 = arith.constant dense<0.000000e+00> : vector<8x8xf32>
    %17 = tpu.matmul %15, %16, %cst_12 {dimension_numbers = #tpu.dot_dimension_numbers<[1], [0], [0], [1], [0, 0, 1, 1], [], []>} : vector<8x128xbf16>, vector<128x8xbf16>, vector<8x8xf32> -> vector<8x8xf32>
    %c0_13 = arith.constant 0 : index
    %c0_14 = arith.constant 0 : index
    %18 = vector.load %arg7[%c0_13, %c0_14] : memref<1x8xf32, #tpu.memory_space<vmem>>, vector<1x8xf32>
    %19 = vector.broadcast %18 : vector<1x8xf32> to vector<8x8xf32>
    %20 = arith.addf %17, %19 : vector<8x8xf32>
    %21 = math.tanh %20 : vector<8x8xf32>
    %cst_15 = arith.constant 2.000000e+00 : f32
    %22 = vector.broadcast %cst_15 : f32 to vector<8x8xf32>
    %23 = arith.mulf %21, %22 : vector<8x8xf32>
    %c0_16 = arith.constant 0 : index
    %c0_17 = arith.constant 0 : index
    %24 = vector.load %arg8[%c0_16, %c0_17] : memref<8x8xf32, #tpu.memory_space<vmem>>, vector<8x8xf32>
    tpu.vector_store %arg8[%c0_16, %c0_17], %23 {strides = array<i32>} : memref<8x8xf32, #tpu.memory_space<vmem>>, vector<8x8xf32>,
    return
  }
  func.func @transform_0(%arg0: i32) -> (i32, i32) {
    %c0_i32 = arith.constant 0 : i32
    %c0_i32_0 = arith.constant 0 : i32
    return %arg0, %c0_i32 : i32, i32
  }
  func.func @transform_1(%arg0: i32) -> (i32, i32) {
    %c0_i32 = arith.constant 0 : i32
    %c0_i32_0 = arith.constant 0 : i32
    %c0_i32_1 = arith.constant 0 : i32
    return %c0_i32, %c0_i32_0 : i32, i32
  }
  func.func @transform_2(%arg0: i32) -> (i32, i32) {
    %c0_i32 = arith.constant 0 : i32
    %c0_i32_0 = arith.constant 0 : i32
    %c0_i32_1 = arith.constant 0 : i32
    return %c0_i32, %c0_i32_0 : i32, i32
  }
  func.func @transform_3(%arg0: i32) -> (i32, i32) {
    %c0_i32 = arith.constant 0 : i32
    %c0_i32_0 = arith.constant 0 : i32
    %c0_i32_1 = arith.constant 0 : i32
    return %c0_i32, %c0_i32_0 : i32, i32
  }
  func.func @transform_4(%arg0: i32) -> (i32, i32) {
    %c0_i32 = arith.constant 0 : i32
    %c0_i32_0 = arith.constant 0 : i32
    %c0_i32_1 = arith.constant 0 : i32
    return %c0_i32, %c0_i32_0 : i32, i32
  }
  func.func @transform_5(%arg0: i32) -> (i32, i32) {
    %c0_i32 = arith.constant 0 : i32
    %c0_i32_0 = arith.constant 0 : i32
    %c0_i32_1 = arith.constant 0 : i32
    return %c0_i32, %c0_i32_0 : i32, i32
  }
  func.func @transform_6(%arg0: i32) -> (i32, i32) {
    %c0_i32 = arith.constant 0 : i32
    %c0_i32_0 = arith.constant 0 : i32
    %c0_i32_1 = arith.constant 0 : i32
    return %c0_i32, %c0_i32_0 : i32, i32
  }
  func.func @transform_7(%arg0: i32) -> (i32, i32) {
    %c0_i32 = arith.constant 0 : i32
    %c0_i32_0 = arith.constant 0 : i32
    return %arg0, %c0_i32 : i32, i32
  }
}

</mosaic_0001>

<bundles_post_ra>
// kernel: tpu_custom_call.1
= control target key start
LH: loop header
LB: loop body
LE: loop exit
PB: predicated region body
PF: predicated region fallthrough
CT: control target
= control target key end

     0   :  { %12 = vsyncpa [#allocation3], 0  ;;  %s665_s0 = inlined_call_operand.vmem [shape: f32[8,16], index: 0, kind: input, shape index: {}]   ;;  %s666_s1 = inlined_call_operand.hbm [shape: bf16[16,128], index: 1, kind: input, shape index: {}]   ;;  %s667_s2 = inlined_call_operand.vmem [shape: f32[1,128], index: 2, kind: input, shape index: {}]   ;;  %s668_s3 = inlined_call_operand.vmem [shape: bf16[128,128], index: 3, kind: input, shape index: {}]   ;;  %s669_s4 = inlined_call_operand.vmem [shape: f32[1,128], index: 4, kind: input, shape index: {}]   ;;  %s670_s5 = inlined_call_operand.vmem [shape: bf16[128,8], index: 5, kind: input, shape index: {}]   ;;  %s671_s6 = inlined_call_operand.vmem [shape: f32[1,8], index: 6, kind: input, shape index: {}]   ;;  %s672_s7 = inlined_call_operand.hbm [shape: f32[8,8], index: 7, kind: output, shape index: {}]  }
   0x1   :  { %13 = vsyncpa [#allocation4], 0  ;;  %s512_s24 = smov [#allocation2]   ;;  %s464_s28 = scalar_lea.hbm %s666_s1, 128 }
   0x2   :  { %s21_s25 = sshll.u32 %s512_s24, 4  ;;  %p465_p0 = scmp.ne.s32.totalorder %s666_s1, %s464_s28  ;;  %s22_s25 = int_to_ptr.vmem [resolvable:$true] %s21_s25 }
   0x3   :  { %p468_p1 = scmp.lt.u32.totalorder %s464_s28, %s666_s1 }
   0x5   :  { %p470_p2 = pnand %p468_p1, %p465_p0 }
   0x7   :  { %473 = shalt.err (!%p470_p2)
}
   0x8   :  { %s474_s10 = scalar_lea.vmem %s22_s25, 128  ;;  %p479_p4 = scmp.lt.s32.totalorder %s22_s25, %s22_s25 }
   0x9   :  { %p475_p3 = scmp.ne.s32.totalorder %s22_s25, %s474_s10  ;;  %p480_p5 = scmp.lt.s32.totalorder %s474_s10, %s474_s10 }
   0xb   :  { %p481_p6 = por %p480_p5, %p479_p4 }
   0xd   :  { %p482_p7 = pnand %p481_p6, %p475_p3 }
   0xf   :  { %485 = shalt.err (!%p482_p7)
}
  0x10   :  { %s513_s11 = smov 64   ;;  %s514_s12 = smov 4  }
  0x11   :  { %27 = dma.hbm_to_vmem [thread:$0]  %s666_s1, 128, %s22_s25, [#allocation3], %s513_s11, %s513_s11, %s514_s12  }
  0x12   :  { %508 = dma.done.wait [#allocation3], 128  }
  0x13   :  { %509 = vsyncadd [#allocation3], 4294967168  ;;  %v515_v0 = vmov 0.0   ;;  %vm516_vm0 = vmmov 0   ;;  %v441_v1 = vld [vmem:[#allocation2] sm:$0xff]   ;;  %vm59_vm1 = vcmask 130048  }
  0x14   :  { %389 = vmatprep.subr.bf16.mxu0 %v515_v0  ;;  %391 = vmatprep.mubr.msk.bf16.mxu0 %vm516_vm0, %v515_v0  ;;  %v42_v2 = vld [vmem:[%s665_s0] sm:$0xff]  ;;  %v443_v5 = vld [vmem:[%s668_s3 + $0x8] sm:$0xff]   ;;  %v444_v6 = vld [vmem:[%s668_s3 + $0x10] sm:$0xff]   ;;  %vm331_vm2 = vcmask 64512  }
  0x15   :  { %395 = vmatprep.subr.bf16.mxu1 %v515_v0  ;;  %411 = vmatprep.mubr.msk.bf16.mxu1 %vm516_vm0, %v515_v0  ;;  %v43_v3 = vpack.c.bf16 %v42_v2, %v42_v2  ;;  %v442_v4 = vld [vmem:[%s668_s3] sm:$0xff]   ;;  %v445_v7 = vld [vmem:[%s668_s3 + $0x18] sm:$0xff]   ;;  %v447_v9 = vld [vmem:[%s668_s3 + $0x28] sm:$0xff]  }
  0x16   :  { %390 = vmatpush3.bf16.msra.mxu0 %v441_v1  ;;  %396 = vmatpush3.bf16.msra.mxu1 %v442_v4  ;;  %v446_v8 = vld [vmem:[%s668_s3 + $0x20] sm:$0xff]   ;;  %v448_v10 = vld [vmem:[%s668_s3 + $0x30] sm:$0xff]   ;;  %v449_v11 = vld [vmem:[%s668_s3 + $0x38] sm:$0xff]  }
  0x17   :  { %415 = vmatprep.subr.bf16.mxu0 %v515_v0  ;;  %397 = vmatprep.subr.bf16.mxu1 %v515_v0  ;;  %v450_v12 = vld [vmem:[%s670_s5] sm:$0xff]   ;;  %v451_v13 = vld [vmem:[%s670_s5 + $0x8] sm:$0xff]   ;;  %v452_v14 = vld [vmem:[%s670_s5 + $0x10] sm:$0xff]  }
  0x18   :  { %v453_v15 = vld [vmem:[%s670_s5 + $0x18] sm:$0xff]   ;;  %v348_v16 = vld [vmem:[%s667_s2] ss:$0 sm:$0xff]  ;;  %v455_v25 = vld [vmem:[%s670_s5 + $0x28] sm:$0xff]  }
  0x19   :  { %392 = vmatmul.mubr.msk.bf16.vlgmr.msra.gmra.mrb[0].mxu0 %vm59_vm1, %v43_v3  ;;  %v454_v24 = vld [vmem:[%s670_s5 + $0x20] sm:$0xff]   ;;  %v456_v26 = vld [vmem:[%s670_s5 + $0x30] sm:$0xff]   ;;  %v457_v27 = vld [vmem:[%s670_s5 + $0x38] sm:$0xff]  }
  0x1a   :  { %431 = vmatprep.mubr.msk.bf16.mxu0 %vm516_vm0, %v515_v0  ;;  %398 = vmatpush3.bf16.msra.mxu1 %v443_v5  ;;  %v351_v28 = vld [vmem:[%s669_s4] ss:$0 sm:$0xff]  ;;  %s517_s4 = smov [#allocation5]  }
  0x1b   :  { %399 = vmatprep.subr.bf16.mxu1 %v515_v0  ;;  %416 = vmatpush3.bf16.msra.mxu0 %v450_v12  ;;  %v360_v36 = vld [vmem:[%s671_s6] ss:$0 sm:$0xff]  ;;  %s339_s5 = sshll.u32 %s517_s4, 4  ;;  %s340_s5 = int_to_ptr.vmem [resolvable:$true] %s339_s5 }
  0x1c   :  { %417 = vmatprep.subr.bf16.mxu0 %v515_v0  ;;  %s486_s26 = scalar_lea.vmem %s340_s5, 128  ;;  %p491_p9 = scmp.lt.s32.totalorder %s340_s5, %s340_s5 }
  0x1d   :  { %p487_p8 = scmp.ne.s32.totalorder %s340_s5, %s486_s26  ;;  %p492_p10 = scmp.lt.s32.totalorder %s486_s26, %s486_s26 }
  0x1e   :  { %400 = vmatpush3.bf16.msra.mxu1 %v444_v6 }
  0x1f   :  { %401 = vmatprep.subr.bf16.mxu1 %v515_v0  ;;  %418 = vmatpush3.bf16.msra.mxu0 %v451_v13  ;;  %p493_p11 = por %p492_p10, %p491_p9 }
  0x20   :  { %419 = vmatprep.subr.bf16.mxu0 %v515_v0 }
  0x21   :  { %p494_p12 = pnand %p493_p11, %p487_p8 }
  0x22   :  { %402 = vmatpush3.bf16.msra.mxu1 %v445_v7 }
  0x23   :  { %403 = vmatprep.subr.bf16.mxu1 %v515_v0  ;;  %420 = vmatpush3.bf16.msra.mxu0 %v452_v14 }
  0x24   :  { %421 = vmatprep.subr.bf16.mxu0 %v515_v0 }
  0x26   :  { %404 = vmatpush3.bf16.msra.mxu1 %v446_v8 }
  0x27   :  { %405 = vmatprep.subr.bf16.mxu1 %v515_v0  ;;  %422 = vmatpush3.bf16.msra.mxu0 %v453_v15 }
  0x28   :  { %423 = vmatprep.subr.bf16.mxu0 %v515_v0 }
  0x2a   :  { %406 = vmatpush3.bf16.msra.mxu1 %v447_v9 }
  0x2b   :  { %407 = vmatprep.subr.bf16.mxu1 %v515_v0  ;;  %424 = vmatpush3.bf16.msra.mxu0 %v454_v24 }
  0x2c   :  { %425 = vmatprep.subr.bf16.mxu0 %v515_v0 }
  0x2e   :  { %408 = vmatpush3.bf16.msra.mxu1 %v448_v10 }
  0x2f   :  { %409 = vmatprep.subr.bf16.mxu1 %v515_v0  ;;  %426 = vmatpush3.bf16.msra.mxu0 %v455_v25 }
  0x30   :  { %427 = vmatprep.subr.bf16.mxu0 %v515_v0 }
  0x32   :  { %410 = vmatpush3.bf16.msra.mxu1 %v449_v11 }
  0x33   :  { %428 = vmatpush3.bf16.msra.mxu0 %v456_v26 }
  0x34   :  { %429 = vmatprep.subr.bf16.mxu0 %v515_v0 }
  0x37   :  { %430 = vmatpush3.bf16.msra.mxu0 %v457_v27 }
  0xec   :  { %v97_v17 = vpop.f32.mrb[0].mxu0 }
  0xed   :  { %v98_v18 = vadd.f32 %v348_v16, %v97_v17  ;;  %v393_v19 = vpop.f32.mrb[1].mxu0 }
  0xee   :  { %v100_v20 = vpop.f32.mrb[2].mxu0 }
  0xef   :  { %v103_v21 = vpack.c.bf16 %v98_v18, %v98_v18  ;;  %v394_v22 = vpop.f32.mrb[3].mxu0 }
  0xf1   :  { %458 = vtanh.bf16 %v103_v21 }
  0xfc   :  { %v459_v23 = vpop.eup %458 }
  0xfd   :  { %412 = vmatmul.mubr.bf16.vlgmr.msra.gmra.mrb[0].mxu1 %v459_v23 }
 0x1d0   :  { %v210_v29 = vpop.f32.mrb[0].mxu1 }
 0x1d1   :  { %v211_v30 = vadd.f32 %v351_v28, %v210_v29  ;;  %v413_v31 = vpop.f32.mrb[1].mxu1 }
 0x1d2   :  { %v213_v32 = vpop.f32.mrb[2].mxu1 }
 0x1d3   :  { %v216_v33 = vpack.c.bf16 %v211_v30, %v211_v30  ;;  %v414_v34 = vpop.f32.mrb[3].mxu1 }
 0x1d5   :  { %460 = vtanh.bf16 %v216_v33 }
 0x1e0   :  { %v461_v35 = vpop.eup %460 }
 0x1e1   :  { %432 = vmatmul.mubr.bf16.vlgmr.msra.gmra.mrb[4].mxu0 %v461_v35 }
 0x2b4   :  { %v323_v37 = vpop.f32.mrb[4].mxu0 }
 0x2b5   :  { %v324_v38 = vadd.f32 %v360_v36, %v323_v37  ;;  %v433_v39 = vpop.f32.mrb[5].mxu0 }
 0x2b6   :  { %v326_v40 = vpop.f32.mrb[6].mxu0 }
 0x2b7   :  { %462 = vtanh.f32 %v324_v38  ;;  %v434_v41 = vpop.f32.mrb[7].mxu0 }
 0x2c1   :  { %v463_v42 = vpop.eup %462 }
 0x2c2   :  { %v330_v43 = vmul.f32 2.0, %v463_v42 }
 0x2c4   :  { %332 = vst.msk [vmem:[#allocation5] sm:$0xff] %vm331_vm2, %v330_v43 }
 0x2c5   :  { %497 = shalt.err (!%p494_p12)
}
 0x2c6   :  { %s498_s28 = scalar_lea.hbm %s672_s7, 128 }
 0x2c7   :  { %p499_p13 = scmp.ne.s32.totalorder %s672_s7, %s498_s28  ;;  %p502_p0 = scmp.lt.u32.totalorder %s498_s28, %s672_s7 }
 0x2c9   :  { %p504_p1 = pnand %p502_p0, %p499_p13 }
 0x2cb   :  { %507 = shalt.err (!%p504_p1)
}
 0x2cc   :  { %342 = dma.vmem_to_hbm [thread:$0]  %s340_s5, 128, %s672_s7, [#allocation4]  }
 0x2cd   :  { %510 = dma.done.wait [#allocation4], 128  }
 0x2ce   :  { %511 = vsyncadd [#allocation4], 4294967168 }
 0x2cf   :  { %346 = vsyncpa [#allocation3], 1 }
 0x2d0   :  { %347 = vsyncpa [#allocation4], 1 }

</bundles_post_ra>
